<compile_context>
chip_gen: v7x
topology: tpu7x:2x2x1
jax: 0.10.0
libtpu: 0.0.40
codegen_flags: <defaults>
</compile_context>

<pallas_src>
import jax
import jax.numpy as jnp
from jax import lax
from jax.experimental import pallas as pl
from jax.experimental.pallas import tpu as pltpu


def _round_up(a, b):
    return -(-a // b) * b


def _build_impulse(noise, decay, wet, sampling_rate):
    """build_impulse(): noise * exp(-softplus(-decay) * t * 500) * sigmoid(wet),
    then impulse[0] = 1."""
    L = noise.shape[0]
    t = jnp.arange(L, dtype=jnp.float32) / float(sampling_rate)
    env = jnp.exp(-jax.nn.softplus(-jnp.asarray(decay, jnp.float32)) * t * 500.0)
    imp = noise.astype(jnp.float32) * env * jax.nn.sigmoid(jnp.asarray(wet, jnp.float32))
    return imp.at[0].set(1.0)


def _build_toeplitz(imp, tn, hw):
    """Banded Toeplitz blocks for a tn-wide output tile with hw-wide halo.
    T_diag[k, j] = imp[j - k]       for 0 <= j - k      < L   shape (tn, tn)
    T_sub [k, j] = imp[hw + j - k]  for 0 <= hw + j - k < L   shape (hw, tn)
    (row k of T_sub corresponds to previous-block position tn - hw + k)."""
    L = imp.shape[0]
    col = jnp.arange(tn, dtype=jnp.int32)[None, :]
    rowd = jnp.arange(tn, dtype=jnp.int32)[:, None]
    rows = jnp.arange(hw, dtype=jnp.int32)[:, None]
    dd = col - rowd
    ds = hw + col - rows
    td = jnp.where((dd >= 0) & (dd < L), imp[jnp.clip(dd, 0, L - 1)], 0.0)
    ts = jnp.where((ds >= 0) & (ds < L), imp[jnp.clip(ds, 0, L - 1)], 0.0)
    return td.astype(jnp.float32), ts.astype(jnp.float32)


def _make_kernel(lenx, tn, ragged):
    def kernel(xc_ref, xp_ref, td_ref, ts_ref, o_ref):
        j = pl.program_id(1)
        xc = xc_ref[...]
        if ragged:
            # Last time tile is ragged: columns past the end of the signal hold
            # undefined data (could be NaN); zero them so the banded matmul's
            # structural zeros stay zero.
            rem = lenx - j * tn
            col = lax.broadcasted_iota(jnp.int32, xc.shape, 1)
            xc = jnp.where(col < rem, xc, jnp.zeros_like(xc))

        o_ref[...] = jnp.dot(
            xc, td_ref[...], preferred_element_type=jnp.float32
        ).astype(o_ref.dtype)

        @pl.when(j > 0)
        def _():
            o_ref[...] += jnp.dot(
                xp_ref[...], ts_ref[...], preferred_element_type=jnp.float32
            ).astype(o_ref.dtype)

    return kernel


def reverb_forward(x, noise, decay, wet, sampling_rate, *,
                   batch_tile=None, time_tile=None):
    """Pallas equivalent of Reverb.forward.  x: (B, lenx, 1) -> (B, lenx, 1)."""
    B, lenx, _ = x.shape
    L = noise.shape[0]
    assert lenx >= L, "lenx must be >= reverb length (torch pad would fail otherwise)"

    # Halo width: only the last (L-1) samples of the previous time block can
    # reach the current one; round up to a whole lane tile.
    hw = max(128, _round_up(max(L - 1, 1), 128))

    # Time tile: 128 on v5e (128-deep MXU), 256 on v6e/v7x; always a multiple
    # of 128, >= L and a multiple of hw (so halo blocks tile the time axis).
    if time_tile is None:
        pref = 256
        try:
            kind = jax.devices()[0].device_kind.lower()
            if "v5e" in kind or "v5 lite" in kind or "v5litepod" in kind:
                pref = 128
        except Exception:
            pass
        tn = max(128 if lenx < pref else pref, _round_up(L, 128), hw)
        tn = _round_up(tn, hw)
    else:
        tn = time_tile
    assert tn % 128 == 0 and tn >= L and tn % hw == 0

    n_t = pl.cdiv(lenx, tn)

    # Batch tile: whole batch by default (fewest grid steps on single-TC parts),
    # capped at 256 rows; for short signals split the batch so dual-TC parts
    # (v7x) have >= 2 blocks on a parallel axis.
    if batch_tile is None:
        bt = B if B <= 256 else 256
        if bt % 8 != 0:
            bt = B
        if n_t < 2 and bt == B and B % 16 == 0:
            bt = B // 2
    else:
        bt = batch_tile
    assert bt % 8 == 0 or bt == B

    n_b = pl.cdiv(B, bt)
    r = tn // hw  # halo (hw-sized) blocks per time tile

    xsq = x.reshape(B, lenx)                                   # free reshape
    imp = _build_impulse(noise, decay, wet, sampling_rate)     # (L,)
    td, ts = _build_toeplitz(imp, tn, hw)                      # (tn,tn), (hw,tn)

    kernel = _make_kernel(lenx, tn, ragged=(lenx % tn != 0))

    out = pl.pallas_call(
        kernel,
        out_shape=jax.ShapeDtypeStruct((B, lenx), x.dtype),
        grid_spec=pltpu.PrefetchScalarGridSpec(
            num_scalar_prefetch=0,
            grid=(n_b, n_t),
            in_specs=[
                # current time block
                pl.BlockSpec((bt, tn), lambda i, j: (i, j)),
                # hw-wide tail of the previous time block (halo); at j == 0 the
                # clamped index loads valid-but-unused data (matmul is skipped).
                pl.BlockSpec((bt, hw),
                             lambda i, j: (i, jnp.maximum(j * r - 1, 0))),
                # grid-invariant Toeplitz operands (DMA'd once)
                pl.BlockSpec((tn, tn), lambda i, j: (0, 0)),   # T_diag
                pl.BlockSpec((hw, tn), lambda i, j: (0, 0)),   # T_sub
            ],
            out_specs=pl.BlockSpec((bt, tn), lambda i, j: (i, j)),
        ),
        compiler_params=pltpu.CompilerParams(
            dimension_semantics=("parallel", "parallel")),
    )(xsq, xsq, td, ts)

    return out.reshape(B, lenx, 1)


def reverb_reference(x, noise, decay, wet, sampling_rate):
    """Pure-JAX mirror of the PyTorch FFT path (for correctness checking)."""
    B, lenx, _ = x.shape
    L = noise.shape[0]
    t = (jnp.arange(L, dtype=jnp.float32) / float(sampling_rate)).reshape(1, L, 1)
    env = jnp.exp(-jax.nn.softplus(-decay) * t * 500.0)
    imp = noise.reshape(1, L, 1) * env * jax.nn.sigmoid(wet)
    imp = imp.at[:, 0].set(1.0)
    imp = jnp.pad(imp, ((0, 0), (0, lenx - L), (0, 0)))
    sig = x[..., 0]
    ker = imp[..., 0]
    sig = jnp.pad(sig, ((0, 0), (0, sig.shape[-1])))
    ker = jnp.pad(ker, ((0, 0), (ker.shape[-1], 0)))
    out = jnp.fft.irfft(jnp.fft.rfft(sig) * jnp.fft.rfft(ker))
    out = out[..., out.shape[-1] // 2:]
    return out[..., None]


if __name__ == "__main__":
    # Module config: length=16, sampling_rate=16000, initial_wet=0, initial_decay=5.
    # Input: (batch=16, lenx=320, 1) — lenx chosen so the kernel exercises the
    # halo matmul and the ragged-last-tile masking path.
    B, LENX, LENGTH, SR = 16, 320, 16, 16000

    key = jax.random.PRNGKey(0)
    k_noise, k_x = jax.random.split(key)
    noise = jax.random.uniform(k_noise, (LENGTH,), jnp.float32) * 2.0 - 1.0
    decay = jnp.array(5.0, jnp.float32)
    wet = jnp.array(0.0, jnp.float32)
    x = jax.random.normal(k_x, (B, LENX, 1), jnp.float32)

    y = jax.block_until_ready(reverb_forward(x, noise, decay, wet, SR))
    assert y.shape == x.shape

    y_ref = reverb_reference(x, noise, decay, wet, SR)
    max_err = float(jnp.max(jnp.abs(y - y_ref)))
    rel_l2 = float(jnp.linalg.norm(y - y_ref) / jnp.linalg.norm(y_ref))
    # Matmuls run at default (single-pass bf16) MXU precision with f32
    # accumulation, so per-sample error vs. the f32 FFT reference is O(1e-2);
    # a structural bug would show up as O(1) relative error.
    assert max_err < 2e-1, f"max abs err vs FFT reference: {max_err}"
    assert rel_l2 < 3e-2, f"relative L2 err vs FFT reference: {rel_l2}"
    print("KERNEL_OK")
</pallas_src>

<mosaic_0001>
module attributes {stable_mosaic.version = 11 : i64} {
  func.func @kernel(%arg0: i32, %arg1: i32, %arg2: memref<16x256xf32, #tpu.memory_space<vmem>>, %arg3: memref<16x128xf32, #tpu.memory_space<vmem>>, %arg4: memref<256x256xf32, #tpu.memory_space<vmem>>, %arg5: memref<128x256xf32, #tpu.memory_space<vmem>>, %arg6: memref<16x256xf32, #tpu.memory_space<vmem>>) attributes {dimension_semantics = [#tpu.dimension_semantics<parallel>, #tpu.dimension_semantics<parallel>], iteration_bounds = array<i64: 1, 2>, scalar_prefetch = 0 : i64, scratch_operands = 0 : i64, tpu.core_type = #tpu.core_type<tc>, window_params = [{transform_indices = @transform_0, window_bounds = array<i64: 16, 256>}, {transform_indices = @transform_1, window_bounds = array<i64: 16, 128>}, {pipeline_mode = #tpu.pipeline_mode<synchronous>, transform_indices = @transform_2, window_bounds = array<i64: 256, 256>}, {pipeline_mode = #tpu.pipeline_mode<synchronous>, transform_indices = @transform_3, window_bounds = array<i64: 128, 256>}, {transform_indices = @transform_4, window_bounds = array<i64: 16, 256>}]} {
    %c0 = arith.constant 0 : index
    %c0_0 = arith.constant 0 : index
    %0 = vector.load %arg2[%c0, %c0_0] : memref<16x256xf32, #tpu.memory_space<vmem>>, vector<16x256xf32>
    %c256_i32 = arith.constant 256 : i32
    %1 = arith.muli %arg1, %c256_i32 : i32
    %c320_i32 = arith.constant 320 : i32
    %2 = arith.subi %c320_i32, %1 : i32
    %3 = tpu.iota {dimensions = array<i32: 1>} : vector<16x256xi32>
    %4 = vector.broadcast %2 : i32 to vector<16x256xi32>
    %5 = arith.cmpi slt, %3, %4 : vector<16x256xi32>
    %cst = arith.constant 0.000000e+00 : f32
    %6 = vector.broadcast %cst : f32 to vector<16x256xf32>
    %7 = arith.select %5, %0, %6 : vector<16x256xi1>, vector<16x256xf32>
    %c0_1 = arith.constant 0 : index
    %c0_2 = arith.constant 0 : index
    %8 = vector.load %arg4[%c0_1, %c0_2] : memref<256x256xf32, #tpu.memory_space<vmem>>, vector<256x256xf32>
    %cst_3 = arith.constant dense<0.000000e+00> : vector<16x256xf32>
    %9 = tpu.matmul %7, %8, %cst_3 {dimension_numbers = #tpu.dot_dimension_numbers<[1], [0], [0], [1], [0, 0, 1, 1], [], []>} : vector<16x256xf32>, vector<256x256xf32>, vector<16x256xf32> -> vector<16x256xf32>
    %c0_4 = arith.constant 0 : index
    %c0_5 = arith.constant 0 : index
    %10 = vector.load %arg6[%c0_4, %c0_5] : memref<16x256xf32, #tpu.memory_space<vmem>>, vector<16x256xf32>
    tpu.vector_store %arg6[%c0_4, %c0_5], %9 {strides = array<i32>} : memref<16x256xf32, #tpu.memory_space<vmem>>, vector<16x256xf32>,
    %c0_i32 = arith.constant 0 : i32
    %11 = arith.cmpi sgt, %arg1, %c0_i32 : i32
    %12 = arith.extui %11 : i1 to i32
    %c0_i32_6 = arith.constant 0 : i32
    %13 = arith.cmpi ne, %12, %c0_i32_6 : i32
    scf.if %13 {
      %c0_7 = arith.constant 0 : index
      %c0_8 = arith.constant 0 : index
      %14 = vector.load %arg6[%c0_7, %c0_8] : memref<16x256xf32, #tpu.memory_space<vmem>>, vector<16x256xf32>
      %c0_9 = arith.constant 0 : index
      %c0_10 = arith.constant 0 : index
      %15 = vector.load %arg3[%c0_9, %c0_10] : memref<16x128xf32, #tpu.memory_space<vmem>>, vector<16x128xf32>
      %c0_11 = arith.constant 0 : index
      %c0_12 = arith.constant 0 : index
      %16 = vector.load %arg5[%c0_11, %c0_12] : memref<128x256xf32, #tpu.memory_space<vmem>>, vector<128x256xf32>
      %cst_13 = arith.constant dense<0.000000e+00> : vector<16x256xf32>
      %17 = tpu.matmul %15, %16, %cst_13 {dimension_numbers = #tpu.dot_dimension_numbers<[1], [0], [0], [1], [0, 0, 1, 1], [], []>} : vector<16x128xf32>, vector<128x256xf32>, vector<16x256xf32> -> vector<16x256xf32>
      %18 = arith.addf %14, %17 : vector<16x256xf32>
      %c0_14 = arith.constant 0 : index
      %c0_15 = arith.constant 0 : index
      %19 = vector.load %arg6[%c0_14, %c0_15] : memref<16x256xf32, #tpu.memory_space<vmem>>, vector<16x256xf32>
      tpu.vector_store %arg6[%c0_14, %c0_15], %18 {strides = array<i32>} : memref<16x256xf32, #tpu.memory_space<vmem>>, vector<16x256xf32>,
    } else {
    }
    return
  }
  func.func @transform_0(%arg0: i32, %arg1: i32) -> (i32, i32) {
    %c0_i32 = arith.constant 0 : i32
    return %arg0, %arg1 : i32, i32
  }
  func.func @transform_1(%arg0: i32, %arg1: i32) -> (i32, i32) {
    %c2_i32 = arith.constant 2 : i32
    %0 = arith.muli %arg1, %c2_i32 : i32
    %c1_i32 = arith.constant 1 : i32
    %1 = arith.subi %0, %c1_i32 : i32
    %c0_i32 = arith.constant 0 : i32
    %2 = arith.maxsi %1, %c0_i32 : i32
    %c0_i32_0 = arith.constant 0 : i32
    return %arg0, %2 : i32, i32
  }
  func.func @transform_2(%arg0: i32, %arg1: i32) -> (i32, i32) {
    %c0_i32 = arith.constant 0 : i32
    %c0_i32_0 = arith.constant 0 : i32
    %c0_i32_1 = arith.constant 0 : i32
    return %c0_i32, %c0_i32_0 : i32, i32
  }
  func.func @transform_3(%arg0: i32, %arg1: i32) -> (i32, i32) {
    %c0_i32 = arith.constant 0 : i32
    %c0_i32_0 = arith.constant 0 : i32
    %c0_i32_1 = arith.constant 0 : i32
    return %c0_i32, %c0_i32_0 : i32, i32
  }
  func.func @transform_4(%arg0: i32, %arg1: i32) -> (i32, i32) {
    %c0_i32 = arith.constant 0 : i32
    return %arg0, %arg1 : i32, i32
  }
}

</mosaic_0001>

<bundles_post_ra>
// kernel: tpu_custom_call.1
= control target key start
LH: loop header
LB: loop body
LE: loop exit
PB: predicated region body
PF: predicated region fallthrough
CT: control target
= control target key end

     0   :  { %s1797_s0 = inlined_call_operand.hbm [shape: f32[16,320], index: 0, kind: input, shape index: {}]   ;;  %s1798_s1 = inlined_call_operand.hbm [shape: f32[16,320], index: 1, kind: input, shape index: {}]   ;;  %s1799_s2 = inlined_call_operand.hbm [shape: f32[256,256], index: 2, kind: input, shape index: {}]   ;;  %s1800_s3 = inlined_call_operand.hbm [shape: f32[128,256], index: 3, kind: input, shape index: {}]   ;;  %s1801_s4 = inlined_call_operand.hbm [shape: f32[16,320], index: 4, kind: output, shape index: {}]  }
   0x1   :  { %1816 = sst [smem:[#allocation23_spill]] %s1801_s4 }
   0x2   :  { %9 = vsyncpa [#allocation3], 0 }
   0x3   :  { %11 = vsyncpa [#allocation3 + $0x1], 0 }
   0x4   :  { %12 = vsyncpa [#allocation6], 0 }
   0x5   :  { %14 = vsyncpa [#allocation6 + $0x1], 0 }
   0x6   :  { %15 = vsyncpa [#allocation9], 0 }
   0x7   :  { %16 = vsyncpa [#allocation4], 0 }
   0x8   :  { %18 = vsyncpa [#allocation4 + $0x1], 0  ;;  %s1365_s15 = smov 0   ;;  %s1367_s16 = smov 0  }
   0x9   :  { %s1369_s17 = smov 0   ;;  %s1371_s18 = smov 0  }
   0xa   :  { %s1373_s19 = smov 0   ;;  %s1375_s20 = smov 0  }
   0xb   :  { %s1377_s21 = smov 0   ;;  %s1379_s22 = smov 0  }
   0xc   :  { %s1381_s23 = smov 0  }
   0xd LB: > { %1817 = sst [smem:[#allocation16_spill]] %s1303_s18  ;;  %s1411_s24 = sadd.s32 4294967295, %s1323_s23   ;;  %s1323_s23 = sphi %s1381_s23, %s24_s23   ;;  %s1319_s22 = sphi %s1379_s22, %s1861_s22   ;;  %s1315_s21 = sphi %s1377_s21, %s1860_s21   ;;  %s1311_s20 = sphi %s1375_s20, %s1859_s20   ;;  %s1307_s19 = sphi %s1373_s19, %s1858_s19   ;;  %s1303_s18 = sphi %s1371_s18, %s1857_s18   ;;  %s1299_s17 = sphi %s1369_s17, %s1856_s17   ;;  %s1295_s16 = sphi %s1367_s16, %s1855_s16   ;;  %s1291_s15 = sphi %s1365_s15, %s1854_s15  }
   0xe   : > { %1818 = sst [smem:[#allocation17_spill]] %s1315_s21  ;;  %s788_s25 = sadd.s32 4294967294, %s1323_s23  }
   0xf   : > { %s33_s26 = sadd.s32 1, %s1319_s22  ;;  %s45_s27 = sadd.s32 1, %s1311_s20 }
  0x10   : > { %p34_p0 = scmp.ge.s32.totalorder %s33_s26, 2  ;;  %p52_p1 = scmp.ne.s32.totalorder %s1311_s20, %s1307_s19 }
  0x11   : > { %p53_p2 = scmp.eq.s32.totalorder %s1323_s23, 0  ;;  %p1802_p3 = scmp.ne.s32.totalorder %s1307_s19, %s1303_s18 }
  0x12   : > { %s1863_s26 = smov (%p34_p0, %s33_s26), 0  ;;  %p1808_p5 = scmp.eq.s32.totalorder %s1411_s24, 0 }
  0x13   : > { %1819 = sst [smem:[#allocation18_spill]] %s1863_s26  ;;  %p1428_p4 = por %p53_p2, %p52_p1 }
  0x14   : > { %s41_s29 = ssub.s32 %s1319_s22, %s1863_s26  ;;  %s1804_s30 = sshll.u32 %s1319_s22, 1 }
  0x15   : > { %s1820_s28 = scalar_select %p1428_p4, 1, 0 }
  0x16   : > { %p43_p6 = scmp.eq.s32.totalorder %s41_s29, 0  ;;  %p1441_p7 = por %p1808_p5, %p1802_p3 }
  0x17   : > { %s790_s6 = sadd.s32 4294967295, %s1804_s30  ;;  %s791_s7 = sshll.u32 %s1863_s26, 1 }
  0x18   : > { %s1821_s5 = scalar_select %p1441_p7, 1, 0 }
  0x19   : > { %s1449_s8 = scalar_select %p43_p6, %s1311_s20, %s45_s27  }
  0x1a   : > { %p70_p8 = scmp.gt.s32.totalorder %s790_s6, 0  ;;  %s792_s9 = sadd.s32 4294967295, %s791_s7 }
  0x1b   : > { %1822 = sst [smem:[#allocation19_spill]] %s1449_s8  ;;  %p74_p9 = scmp.gt.s32.totalorder %s792_s9, 0 }
  0x1c   : > { %s81_s10 = sadd.s32 1, %s1299_s17  ;;  %s1865_s6 = smov (!%p70_p8, %s790_s6), 0 }
  0x1d   : > { %s1867_s9 = smov (!%p74_p9, %s792_s9), 0  ;;  %p88_p10 = scmp.ne.s32.totalorder %s1299_s17, %s1295_s16 }
  0x1e   : > { %p94_p11 = scmp.ne.s32.totalorder %s1295_s16, %s1291_s15  ;;  %s77_s11 = ssub.s32 %s1865_s6, %s1867_s9 }
  0x1f   : > { %p162_p12 = scmp.eq.s32.totalorder %s1411_s24, 1  ;;  %p79_p13 = scmp.eq.s32.totalorder %s77_s11, 0 }
  0x20   : > { %p1462_p0 = por %p88_p10, %p53_p2  ;;  %p1468_p6 = por %p94_p11, %p1808_p5 }
  0x21   : > { %p1475_p8 = por %p162_p12, %p52_p1  ;;  %p168_p9 = scmp.eq.s32.totalorder %s788_s25, 1 }
  0x22   : > { %s1823_s12 = scalar_select %p1462_p0, 1, 0 }
  0x23   : > { %s1824_s13 = scalar_select %p1468_p6, 1, 0 }
  0x24   : > { %s1825_s14 = scalar_select %p1475_p8, 1, 0 }
  0x25   : > { %s1480_s15 = scalar_select %p79_p13, %s1299_s17, %s81_s10  }
  0x26   : > { %1826 = sst [smem:[#allocation20_spill]] %s1825_s14  ;;  %p793_p3 = scmp.ge.s32.totalorder %s1323_s23, 1 }
  0x27   : > { %1827 = sst [smem:[#allocation21_spill]] %s1480_s15  ;;  %p175_p7 = scmp.lt.s32.totalorder %s1323_s23, 3 }
  0x28   : > { %p1828_p2 = scmp.ne.s32.totalorder %s1307_s19, %s1303_s18  ;;  %s1325_s7 = smov [#allocation7]  }
  0x29   : > { %p1493_p11 = pnand %p793_p3, %p175_p7  ;;  %s187_s9 = sshll.u32 %s1325_s7, 4  ;;  %s188_s9 = int_to_ptr.vmem [resolvable:$true] %s187_s9 }
  0x2a   : > { %p1489_p10 = por %p168_p9, %p1828_p2  ;;  %s1326_s10 = smov [#allocation8]  }
  0x2b   : > { %s1831_s29 = scalar_select %p1493_p11, 1, 0 }
  0x2c   : > { %s1829_s27 = scalar_select %p1489_p10, 1, 0 }
  0x2d   : > { %p993_p1 = pneg %p1493_p11  ;;  %s200_s11 = sshll.u32 %s1326_s10, 4  ;;  %s1505_s11 = int_to_ptr.vmem [resolvable:$true] %s200_s11 }
  0x2e   : > { %1830 = sst [smem:[#allocation22_spill]] %s1829_s27  ;;  %s1093_s8 = scalar_lea.hbm %s1799_s2, 8192 }
  0x2f   : > { %p1501_p12 = pnand %p993_p1, %p1808_p5  ;;  %p1094_p3 = scmp.ne.s32.totalorder %s1799_s2, %s1093_s8 }
  0x30   : > { %p1100_p2 = scmp.lt.u32.totalorder %s1093_s8, %s1799_s2 }
  0x31   : > { %p1095_p7 = pneg %p1501_p12 }
  0x33   : > { %p1096_p13 = pnand %p1095_p7, %p1094_p3 }
  0x35   : > { %p1097_p9 = pneg %p1096_p13 }
  0x37   : > { %p1102_p1 = pnand %p1100_p2, %p1097_p9 }
  0x39   : > { %1105 = shalt.err (!%p1102_p1)
}
  0x3a   : > { %s1106_s10 = scalar_lea.vmem %s188_s9, 8192  ;;  %p1114_p6 = scmp.lt.s32.totalorder %s188_s9, %s188_s9 }
  0x3b   : > { %p1107_p5 = scmp.ne.s32.totalorder %s188_s9, %s1106_s10  ;;  %p1115_p11 = scmp.lt.s32.totalorder %s1106_s10, %s1106_s10 }
  0x3d   : > { %p1109_p10 = pnand %p1107_p5, %p1095_p7  ;;  %p1116_p0 = por %p1115_p11, %p1114_p6 }
  0x3f   : > { %p1110_p8 = pneg %p1109_p10 }
  0x41   : > { %p1117_p4 = pnand %p1116_p0, %p1110_p8 }
  0x43   : > { %1120 = shalt.err (!%p1117_p4)
}
  0x44   : > { %s1327_s26 = smov 256   ;;  %s1328_s30 = smov 16  }
  0x45   : > { %996 = dma.hbm_to_vmem [thread:$0]  (!%p1501_p12), %s1799_s2, 8192, %s188_s9, [#allocation6], %s1327_s26, %s1327_s26, %s1328_s30  }
  0x46   : > { %s1121_s7 = scalar_lea.hbm %s1800_s3, 4096 }
  0x47   : > { %p1122_p5 = scmp.ne.s32.totalorder %s1800_s3, %s1121_s7  ;;  %p1128_p6 = scmp.lt.u32.totalorder %s1121_s7, %s1800_s3 }
  0x49   : > { %p1124_p4 = pnand %p1122_p5, %p1095_p7 }
  0x4b   : > { %p1125_p0 = pneg %p1124_p4 }
  0x4d   : > { %p1130_p8 = pnand %p1128_p6, %p1125_p0 }
  0x4f   : > { %1133 = shalt.err (!%p1130_p8)
}
  0x50   : > { %s1134_s9 = scalar_lea.vmem %s1505_s11, 4096  ;;  %p1142_p13 = scmp.lt.s32.totalorder %s1505_s11, %s1505_s11 }
  0x51   : > { %p1135_p10 = scmp.ne.s32.totalorder %s1505_s11, %s1134_s9  ;;  %p1143_p9 = scmp.lt.s32.totalorder %s1134_s9, %s1134_s9 }
  0x53   : > { %p1137_p11 = pnand %p1135_p10, %p1095_p7  ;;  %p1144_p2 = por %p1143_p9, %p1142_p13 }
  0x55   : > { %p1138_p3 = pneg %p1137_p11 }
  0x57   : > { %p1145_p1 = pnand %p1144_p2, %p1138_p3 }
  0x59   : > { %1148 = shalt.err (!%p1145_p1)
}
  0x5a   : > { %999 = dma.hbm_to_vmem [thread:$0]  (!%p1501_p12), %s1800_s3, 4096, %s1505_s11, [#allocation9], %s1327_s26, %s1327_s26, %s1328_s30  }
  0x5b   : > { %p796_p5 = scmp.ge.s32.totalorder %s1323_s23, 2 }
  0x5c   : > { %p1833_p7 = scmp.ne.s32.totalorder (!%p796_p5), %s1820_s28, 0 }
  0x5d   : > { %210 = sbr.rel (%p796_p5) target bundleno = 163 (0xa3), region = 24 }
  0x64   : > { %213 = sbr.rel (!%p1833_p7) target bundleno = 135 (0x87), region = 28  ;;  %s214_s14 = sand.u32 (%p1833_p7), 1, %s1311_s20  }
  0x65   : > { %s1834_s18 = sshll.u32 (%p1833_p7), %s1319_s22, 1  ;;  %s797_s15 = sshll.u32 (%p1833_p7), %s214_s14, 5 }
  0x66   : > { %s221_s8 = ssub.s32 (%p1833_p7), 3, %s1834_s18  ;;  %s1568_s26 = scalar_lea.sflag (%p1833_p7), [#allocation3], %s214_s14 }
  0x67   : > { %p222_p4 = scmp.lt.s32.totalorder (%p1833_p7), %s221_s8, 2  ;;  %s218_s30 = scalar_lea.vmem (%p1833_p7), [#allocation2], %s797_s15 }
  0x6b   : > { %s1869_s8 = smov (!%p222_p4, %s221_s8), 2 }
  0x6c   : > { %s1565_s25 = sshll.u32 %s1869_s8, 8 }
  0x6d   : > { %s226_s11 = ssub.s32 512, %s1565_s25 }
  0x6e   : > { %227 = vsyncadd %s1568_s26, %s226_s11  ;;  %p800_p12 = scmp.ne.s32.totalorder %s1565_s25, 0  ;;  %s831_s28 = sshll.u32 %s1319_s22, 8 }
  0x6f   : > { %s1576_s10 = scalar_lea.hbm %s1797_s0, %s831_s28  ;;  %s802_s9 = sshll.u32 %s1869_s8, 3 }
  0x70   : > { %s235_s4 = sshll.u32 %s218_s30, 4  ;;  %s1149_s21 = scalar_lea.hbm %s1576_s10, %s1565_s25  ;;  %s1579_s4 = int_to_ptr.vmem [resolvable:$true] %s235_s4 }
  0x71   : > { %p1150_p0 = scmp.ne.s32.totalorder %s1576_s10, %s1149_s21  ;;  %s1153_s15 = scalar_lea.hbm %s1797_s0, 768 }
  0x72   : > { %p1154_p10 = scmp.lt.u32.totalorder %s1576_s10, %s1797_s0  ;;  %p1155_p11 = scmp.lt.u32.totalorder %s1153_s15, %s1149_s21 }
  0x73   : > { %p1151_p6 = pnand %p1150_p0, %p800_p12  ;;  %p1157_p13 = scmp.lt.u32.totalorder %s1149_s21, %s1576_s10 }
  0x74   : > { %p1156_p3 = por %p1155_p11, %p1154_p10 }
  0x75   : > { %p1152_p8 = pneg %p1151_p6 }
  0x76   : > { %p1158_p9 = por %p1157_p13, %p1156_p3 }
  0x78   : > { %p1159_p2 = pnand %p1158_p9, %p1152_p8 }
  0x7a   : > { %1162 = shalt.err (!%p1159_p2)
}
  0x7b   : > { %s1163_s30 = scalar_lea.vmem %s1579_s4, %s1565_s25  ;;  %s1329_s27 = smov [#allocation2]  }
  0x7c   : > { %p1164_p1 = scmp.ne.s32.totalorder %s1579_s4, %s1163_s30  ;;  %s1167_s7 = sshll.u32 %s1329_s27, 4  ;;  %s1168_s7 = int_to_ptr.vmem [resolvable:$false] %s1167_s7 }
  0x7d   : > { %s1169_s14 = scalar_lea.vmem %s1168_s7, 1024  ;;  %p1170_p0 = scmp.lt.s32.totalorder %s1579_s4, %s1168_s7 }
  0x7e   : > { %p1165_p7 = pnand %p1164_p1, %p800_p12  ;;  %p1171_p6 = scmp.lt.s32.totalorder %s1169_s14, %s1163_s30 }
  0x80   : > { %p1166_p4 = pneg %p1165_p7  ;;  %p1172_p10 = por %p1171_p6, %p1170_p0 }
  0x82   : > { %p1173_p11 = pnand %p1172_p10, %p1166_p4 }
  0x84   : > { %1176 = shalt.err (!%p1173_p11)
}
  0x85   : > { %s1330_s21 = smov 384   ;;  %s1331_s18 = smov 256  }
  0x86   : > { %241 = dma.hbm_to_vmem [thread:$0]  (%p800_p12), %s1576_s10, %s1565_s25, %s1579_s4, %s1568_s26, %s1330_s21, %s1331_s18, %s802_s9  }
  0x87 PF: > { %s245_s15 = sand.u32 1, %s1323_s23   ;;  %s247_s11 = sand.u32 1, %s1299_s17  }
  0x88   : > { %s805_s28 = sshll.u32 %s247_s11, 4  ;;  %s808_s30 = sshll.u32 %s1865_s6, 7 }
  0x89   : > { %s1614_s14 = scalar_lea.hbm %s1798_s1, %s808_s30  ;;  %s249_s8 = scalar_lea.vmem [#allocation5], %s805_s28 }
  0x8a   : > { %s262_s25 = sshll.u32 %s249_s8, 4  ;;  %s1618_s26 = scalar_lea.sflag [#allocation6], %s245_s15  ;;  %s1616_s25 = int_to_ptr.vmem [resolvable:$true] %s262_s25 }
  0x8b   : > { %s1177_s10 = scalar_lea.hbm %s1614_s14, 256  ;;  %p1835_p8 = scmp.ne.s32.totalorder %s1823_s12, 0 }
  0x8c   : > { %p1178_p12 = scmp.ne.s32.totalorder %s1614_s14, %s1177_s10  ;;  %s1181_s4 = scalar_lea.hbm %s1798_s1, 768 }
  0x8d   : > { %p1182_p9 = scmp.lt.u32.totalorder %s1614_s14, %s1798_s1  ;;  %p1183_p2 = scmp.lt.u32.totalorder %s1181_s4, %s1177_s10 }
  0x8e   : > { %p1179_p3 = pnand %p1178_p12, %p1835_p8  ;;  %p1185_p7 = scmp.lt.u32.totalorder %s1177_s10, %s1614_s14 }
  0x8f   : > { %p1184_p1 = por %p1183_p2, %p1182_p9 }
  0x90   : > { %p1180_p13 = pneg %p1179_p3 }
  0x91   : > { %p1186_p4 = por %p1185_p7, %p1184_p1 }
  0x93   : > { %p1187_p0 = pnand %p1186_p4, %p1180_p13 }
  0x95   : > { %1190 = shalt.err (!%p1187_p0)
}
  0x96   : > { %s1191_s15 = scalar_lea.vmem %s1616_s25, 256  ;;  %s1332_s11 = smov [#allocation5]  }
  0x97   : > { %p1192_p6 = scmp.ne.s32.totalorder %s1616_s25, %s1191_s15  ;;  %s1195_s28 = sshll.u32 %s1332_s11, 4  ;;  %s1196_s28 = int_to_ptr.vmem [resolvable:$false] %s1195_s28 }
  0x98   : > { %s1197_s30 = scalar_lea.vmem %s1196_s28, 512  ;;  %p1198_p12 = scmp.lt.s32.totalorder %s1616_s25, %s1196_s28 }
  0x99   : > { %p1193_p10 = pnand %p1192_p6, %p1835_p8  ;;  %p1199_p3 = scmp.lt.s32.totalorder %s1197_s30, %s1191_s15 }
  0x9b   : > { %p1194_p11 = pneg %p1193_p10  ;;  %p1200_p9 = por %p1199_p3, %p1198_p12 }
  0x9d   : > { %p1201_p2 = pnand %p1200_p9, %p1194_p11 }
  0x9f   : > { %1204 = shalt.err (!%p1201_p2)
}
  0xa0   : > { %s1333_s27 = smov 384   ;;  %s1334_s7 = smov 128  }
  0xa1   : > { %s1335_s8 = smov 8  }
  0xa2   : > { %985 = dma.hbm_to_vmem [thread:$0]  (%p1835_p8), %s1614_s14, 256, %s1616_s25, %s1618_s26, %s1333_s27, %s1334_s7, %s1335_s8  }
  0xa3 PF: > { %p1836_p13 = scmp.ne.s32.totalorder %s1831_s29, 0 }
  0xa4   : > { %s1645_s10 = sand.u32 (!%p1836_p13), 1, %s1307_s19   ;;  %p1837_p1 = scmp.ne.s32.totalorder (!%p1836_p13), %s1821_s5, 0 }
  0xa5   : > { %274 = sbr.rel (%p1836_p13) target bundleno = 725 (0x2d5), region = 36  ;;  %s810_s6 = sshll.u32 (!%p1836_p13), %s1645_s10, 5 }
  0xa6   : > { %s277_s9 = scalar_lea.sflag (!%p1836_p13), [#allocation3], %s1645_s10  ;;  %s1651_s4 = scalar_lea.vmem (!%p1836_p13), [#allocation2], %s810_s6 }
  0xac   : > { %1270 = dma.done.wait (%p1837_p1), %s277_s9, 512  }
  0xad   : > { %1272 = vsyncadd (%p1837_p1), %s277_s9, 4294966784  ;;  %s285_s12 = sand.u32 1, %s1411_s24   ;;  %s287_s29 = sand.u32 1, %s1295_s16  }
  0xae   : > { %s1659_s14 = sshll.u32 %s287_s29, 4  ;;  %s286_s25 = scalar_lea.sflag [#allocation6], %s285_s12 }
  0xaf   : > { %s289_s26 = scalar_lea.vmem [#allocation5], %s1659_s14  ;;  %p1838_p8 = scmp.ne.s32.totalorder %s1824_s13, 0 }
  0xb1   : > { %1274 = dma.done.wait (%p1838_p8), %s286_s25, 256  }
  0xb2   : > { %1276 = vsyncadd (%p1838_p8), %s286_s25, 4294967040  ;;  %p1839_p7 = scmp.eq.s32.totalorder %s1411_s24, 0 }
  0xb4   : > { %1278 = dma.done.wait (%p1839_p7), [#allocation6], 8192   ;;  %p1840_p4 = pmov %p1839_p7 }
  0xb6   : > { %1280 = vsyncadd (%p1840_p4), [#allocation6], 4294959104  ;;  %p1841_p0 = pmov %p1840_p4 }
  0xb8   : > { %1282 = dma.done.wait (%p1841_p0), [#allocation9], 4096   ;;  %p1842_p6 = pmov %p1841_p0 }
  0xb9   : > { %v361_v0 = vld [vmem:[#allocation7 + $0x8] sm:$0xff]  ;;  %v363_v1 = vld [vmem:[#allocation7 + $0x18] sm:$0xff]  ;;  %v360_v2 = vld [vmem:[#allocation7] sm:$0xff]  ;;  %s1843_s24 = sld [smem:[#allocation17_spill]]  ;;  %v350_v19 = vlaneseq  ;;  %s1694_s21 = scalar_lea.vmem [#allocation10], %s810_s6 }
  0xba   : > { %1284 = vsyncadd (%p1842_p6), [#allocation9], 4294963200  ;;  %v837_v3 = vpack.c.bf16 %v363_v1, %v361_v0  ;;  %v362_v4 = vld [vmem:[#allocation7 + $0x10] sm:$0xff]  ;;  %v365_v5 = vld [vmem:[#allocation7 + $0x28] sm:$0xff] }
  0xbb   : > { %v367_v6 = vld [vmem:[#allocation7 + $0x38] sm:$0xff]  ;;  %v839_v7 = vpack.c.bf16 %v362_v4, %v360_v2  ;;  %v364_v9 = vld [vmem:[#allocation7 + $0x20] sm:$0xff]  ;;  %v366_v10 = vld [vmem:[#allocation7 + $0x30] sm:$0xff]  ;;  %v1675_v26 = vand.u32 127, %v350_v19 }
  0xbc   : > { %v841_v8 = vpack.c.bf16 %v367_v6, %v365_v5  ;;  %v369_v11 = vld [vmem:[#allocation7 + $0x48] sm:$0xff]  ;;  %838 = vmatprep.subr.bf16.mxu0 %v837_v3  ;;  %933 = vmatprep.subr.bf16.mxu1 %v837_v3  ;;  %v371_v12 = vld [vmem:[#allocation7 + $0x58] sm:$0xff]  ;;  %v843_v13 = vpack.c.bf16 %v366_v10, %v364_v9  ;;  %v368_v15 = vld [vmem:[#allocation7 + $0x40] sm:$0xff] }
  0xbd   : > { %840 = vmatpush1.bf16.msra.mxu0 %v839_v7  ;;  %949 = vmatpush1.bf16.msra.mxu1 %v839_v7  ;;  %v845_v14 = vpack.c.bf16 %v371_v12, %v369_v11  ;;  %v370_v16 = vld [vmem:[#allocation7 + $0x50] sm:$0xff]  ;;  %v373_v17 = vld [vmem:[#allocation7 + $0x68] sm:$0xff]  ;;  %v375_v18 = vld [vmem:[#allocation7 + $0x78] sm:$0xff]  ;;  %v352_v33 = vadd.s32 128, %v1675_v26 }
  0xbe   : > { %842 = vmatprep.subr.bf16.mxu0 %v841_v8  ;;  %934 = vmatprep.subr.bf16.mxu1 %v841_v8  ;;  %v847_v20 = vpack.c.bf16 %v370_v16, %v368_v15  ;;  %v849_v21 = vpack.c.bf16 %v375_v18, %v373_v17  ;;  %v372_v22 = vld [vmem:[#allocation7 + $0x60] sm:$0xff]  ;;  %v374_v23 = vld [vmem:[#allocation7 + $0x70] sm:$0xff]  ;;  %v377_v24 = vld [vmem:[#allocation7 + $0x88] sm:$0xff] }
  0xbf   : > { %v379_v25 = vld [vmem:[#allocation7 + $0x98] sm:$0xff]  ;;  %s815_s5 = sshll.u32 %s1843_s24, 8  ;;  %v851_v27 = vpack.c.bf16 %v374_v23, %v372_v22  ;;  %v376_v29 = vld [vmem:[#allocation7 + $0x80] sm:$0xff]  ;;  %v378_v30 = vld [vmem:[#allocation7 + $0x90] sm:$0xff]  ;;  %p820_p10 = scmp.le.s32.totalorder %s1843_s24, 0 }
  0xc0   : > { %v853_v28 = vpack.c.bf16 %v379_v25, %v377_v24  ;;  %s1679_s13 = ssub.s32 320, %s815_s5  ;;  %v381_v31 = vld [vmem:[#allocation7 + $0xa8] sm:$0xff]  ;;  %v383_v32 = vld [vmem:[#allocation7 + $0xb8] sm:$0xff]  ;;  %v855_v34 = vpack.c.bf16 %v378_v30, %v376_v29  ;;  %v380_v37 = vld [vmem:[#allocation7 + $0xa0] sm:$0xff] }
  0xc1   : > { %844 = vmatpush1.bf16.msra.mxu0 %v843_v13  ;;  %950 = vmatpush1.bf16.msra.mxu1 %v843_v13  ;;  %v353_v35 = vstv %s1679_s13  ;;  %v857_v36 = vpack.c.bf16 %v383_v32, %v381_v31  ;;  %v382_v38 = vld [vmem:[#allocation7 + $0xb0] sm:$0xff]  ;;  %v385_v39 = vld [vmem:[#allocation7 + $0xc8] sm:$0xff]  ;;  %v387_v40 = vld [vmem:[#allocation7 + $0xd8] sm:$0xff] }
  0xc2   : > { %846 = vmatprep.subr.bf16.mxu0 %v845_v14  ;;  %935 = vmatprep.subr.bf16.mxu1 %v845_v14  ;;  %vm355_vm0 = vcmp.lt.s32.totalorder %v352_v33, %v353_v35  ;;  %v859_v41 = vpack.c.bf16 %v382_v38, %v380_v37  ;;  %v384_v42 = vld [vmem:[#allocation7 + $0xc0] sm:$0xff]  ;;  %v861_v43 = vpack.c.bf16 %v387_v40, %v385_v39  ;;  %v386_v44 = vld [vmem:[#allocation7 + $0xd0] sm:$0xff]  ;;  %v345_v45 = vld [vmem:[%s1651_s4 + $0x8] sm:$0xff] }
  0xc3   : > { %v347_v46 = vld [vmem:[%s1651_s4 + $0x18] sm:$0xff]  ;;  %v389_v47 = vld [vmem:[#allocation7 + $0xe8] sm:$0xff]  ;;  %816 = vmatprep.mubr.msk.f32.mxu0 %vm355_vm0, %v345_v45  ;;  %v863_v49 = vpack.c.bf16 %v386_v44, %v384_v42  ;;  %v388_v51 = vld [vmem:[#allocation7 + $0xe0] sm:$0xff]  ;;  %vm354_vm1 = vcmp.lt.s32.totalorder %v1675_v26, %v353_v35 }
  0xc4   : > { %v391_v48 = vld [vmem:[#allocation7 + $0xf8] sm:$0xff]  ;;  %818 = vmatprep.mubr.msk.f32.mxu1 %vm355_vm0, %v347_v46  ;;  %v390_v52 = vld [vmem:[#allocation7 + $0xf0] sm:$0xff]  ;;  %v393_v53 = vld [vmem:[#allocation7 + $0x108] sm:$0xff] }
  0xc5   : > { %848 = vmatpush1.bf16.msra.mxu0 %v847_v20  ;;  %951 = vmatpush1.bf16.msra.mxu1 %v847_v20  ;;  %v865_v50 = vpack.c.bf16 %v391_v48, %v389_v47  ;;  %v395_v54 = vld [vmem:[#allocation7 + $0x118] sm:$0xff]  ;;  %v867_v55 = vpack.c.bf16 %v390_v52, %v388_v51  ;;  %v392_v57 = vld [vmem:[#allocation7 + $0x100] sm:$0xff]  ;;  %v394_v58 = vld [vmem:[#allocation7 + $0x110] sm:$0xff]  ;;  %v1336_v51 = vmov (!%p820_p10), 0.0  }
  0xc6   : > { %850 = vmatprep.subr.bf16.mxu0 %v849_v21  ;;  %936 = vmatprep.subr.bf16.mxu1 %v849_v21  ;;  %v869_v56 = vpack.c.bf16 %v395_v54, %v393_v53  ;;  %v397_v59 = vld [vmem:[#allocation7 + $0x128] sm:$0xff]  ;;  %v399_v60 = vld [vmem:[#allocation7 + $0x138] sm:$0xff]  ;;  %v871_v61 = vpack.c.bf16 %v394_v58, %v392_v57  ;;  %v396_v63 = vld [vmem:[#allocation7 + $0x120] sm:$0xff] }
  0xc7   : > { %v873_v62 = vpack.c.bf16 %v399_v60, %v397_v59  ;;  %v398_v0 = vld [vmem:[#allocation7 + $0x130] sm:$0xff]  ;;  %v401_v1 = vld [vmem:[#allocation7 + $0x148] sm:$0xff]  ;;  %v403_v2 = vld [vmem:[#allocation7 + $0x158] sm:$0xff] }
  0xc8   : > { %v875_v3 = vpack.c.bf16 %v398_v0, %v396_v63  ;;  %v877_v4 = vpack.c.bf16 %v403_v2, %v401_v1  ;;  %v400_v5 = vld [vmem:[#allocation7 + $0x140] sm:$0xff]  ;;  %v402_v6 = vld [vmem:[#allocation7 + $0x150] sm:$0xff]  ;;  %v405_v7 = vld [vmem:[#allocation7 + $0x168] sm:$0xff] }
  0xc9   : > { %852 = vmatpush1.bf16.msra.mxu0 %v851_v27  ;;  %952 = vmatpush1.bf16.msra.mxu1 %v851_v27  ;;  %v407_v8 = vld [vmem:[#allocation7 + $0x178] sm:$0xff]  ;;  %v879_v9 = vpack.c.bf16 %v402_v6, %v400_v5  ;;  %v404_v11 = vld [vmem:[#allocation7 + $0x160] sm:$0xff]  ;;  %v406_v12 = vld [vmem:[#allocation7 + $0x170] sm:$0xff] }
  0xca   : > { %854 = vmatprep.subr.bf16.mxu0 %v853_v28  ;;  %937 = vmatprep.subr.bf16.mxu1 %v853_v28  ;;  %v881_v10 = vpack.c.bf16 %v407_v8, %v405_v7  ;;  %v409_v13 = vld [vmem:[#allocation7 + $0x188] sm:$0xff]  ;;  %v411_v14 = vld [vmem:[#allocation7 + $0x198] sm:$0xff]  ;;  %v883_v15 = vpack.c.bf16 %v406_v12, %v404_v11  ;;  %v408_v17 = vld [vmem:[#allocation7 + $0x180] sm:$0xff] }
  0xcb   : > { %v885_v16 = vpack.c.bf16 %v411_v14, %v409_v13  ;;  %v410_v18 = vld [vmem:[#allocation7 + $0x190] sm:$0xff]  ;;  %v413_v19 = vld [vmem:[#allocation7 + $0x1a8] sm:$0xff]  ;;  %v415_v20 = vld [vmem:[#allocation7 + $0x1b8] sm:$0xff] }
  0xcc   : > { %v887_v21 = vpack.c.bf16 %v410_v18, %v408_v17  ;;  %v889_v22 = vpack.c.bf16 %v415_v20, %v413_v19  ;;  %v412_v23 = vld [vmem:[#allocation7 + $0x1a0] sm:$0xff]  ;;  %v414_v24 = vld [vmem:[#allocation7 + $0x1b0] sm:$0xff]  ;;  %v417_v25 = vld [vmem:[#allocation7 + $0x1c8] sm:$0xff] }
  0xcd   : > { %856 = vmatpush1.bf16.msra.mxu0 %v855_v34  ;;  %953 = vmatpush1.bf16.msra.mxu1 %v855_v34  ;;  %v419_v27 = vld [vmem:[#allocation7 + $0x1d8] sm:$0xff]  ;;  %v891_v28 = vpack.c.bf16 %v414_v24, %v412_v23  ;;  %v416_v30 = vld [vmem:[#allocation7 + $0x1c0] sm:$0xff]  ;;  %v418_v31 = vld [vmem:[#allocation7 + $0x1d0] sm:$0xff] }
  0xce   : > { %858 = vmatprep.subr.bf16.mxu0 %v857_v36  ;;  %938 = vmatprep.subr.bf16.mxu1 %v857_v36  ;;  %v893_v29 = vpack.c.bf16 %v419_v27, %v417_v25  ;;  %v421_v32 = vld [vmem:[#allocation7 + $0x1e8] sm:$0xff]  ;;  %v423_v33 = vld [vmem:[#allocation7 + $0x1f8] sm:$0xff]  ;;  %v895_v34 = vpack.c.bf16 %v418_v31, %v416_v30  ;;  %v420_v37 = vld [vmem:[#allocation7 + $0x1e0] sm:$0xff] }
  0xcf   : > { %v897_v36 = vpack.c.bf16 %v423_v33, %v421_v32  ;;  %v422_v38 = vld [vmem:[#allocation7 + $0x1f0] sm:$0xff]  ;;  %v344_v40 = vld [vmem:[%s1651_s4] sm:$0xff]  ;;  %v516_v26 = vld [vmem:[#allocation8 + $0x8] sm:$0xff] (!%p820_p10) }
  0xd0   : > { %v899_v39 = vpack.c.bf16 %v422_v38, %v420_v37  ;;  %v518_v35 = vld [vmem:[#allocation8 + $0x18] sm:$0xff] (!%p820_p10)  ;;  %v515_v46 = vld [vmem:[#allocation8] sm:$0xff] (!%p820_p10)  ;;  %v517_v48 = vld [vmem:[#allocation8 + $0x10] sm:$0xff] (!%p820_p10) }
  0xd1   : > { %860 = vmatpush1.bf16.msra.mxu0 %v859_v41  ;;  %954 = vmatpush1.bf16.msra.mxu1 %v859_v41  ;;  %v346_v41 = vld [vmem:[%s1651_s4 + $0x10] sm:$0xff]  ;;  %v901_v47 = vpack.c.bf16 (!%p820_p10), %v518_v35, %v516_v26  ;;  %v903_v52 = vpack.c.bf16 (!%p820_p10), %v517_v48, %v515_v46  ;;  %v519_v54 = vld [vmem:[#allocation8 + $0x20] sm:$0xff] (!%p820_p10)  ;;  %v526_v57 = vld [vmem:[#allocation8 + $0x58] sm:$0xff] (!%p820_p10) }
  0xd2   : > { %862 = vmatprep.subr.bf16.mxu0 %v861_v43  ;;  %939 = vmatprep.subr.bf16.mxu1 %v861_v43  ;;  %v523_v60 = vld [vmem:[#allocation8 + $0x40] sm:$0xff] (!%p820_p10)  ;;  %v530_v63 = vld [vmem:[#allocation8 + $0x78] sm:$0xff] (!%p820_p10) }
  0xd3   : > { %v527_v2 = vld [vmem:[#allocation8 + $0x60] sm:$0xff] (!%p820_p10)  ;;  %v534_v5 = vld [vmem:[#allocation8 + $0x98] sm:$0xff] (!%p820_p10) }
  0xd4   : > { %v531_v8 = vld [vmem:[#allocation8 + $0x80] sm:$0xff] (!%p820_p10)  ;;  %v538_v11 = vld [vmem:[#allocation8 + $0xb8] sm:$0xff] (!%p820_p10) }
  0xd5   : > { %864 = vmatpush1.bf16.msra.mxu0 %v863_v49  ;;  %955 = vmatpush1.bf16.msra.mxu1 %v863_v49  ;;  %v520_v49 = vld [vmem:[#allocation8 + $0x28] sm:$0xff] (!%p820_p10)  ;;  %v535_v14 = vld [vmem:[#allocation8 + $0xa0] sm:$0xff] (!%p820_p10)  ;;  %v542_v17 = vld [vmem:[#allocation8 + $0xd8] sm:$0xff] (!%p820_p10) }
  0xd6   : > { %866 = vmatprep.subr.bf16.mxu0 %v865_v50  ;;  %940 = vmatprep.subr.bf16.mxu1 %v865_v50  ;;  %v522_v50 = vld [vmem:[#allocation8 + $0x38] sm:$0xff] (!%p820_p10)  ;;  %v539_v20 = vld [vmem:[#allocation8 + $0xc0] sm:$0xff] (!%p820_p10) }
  0xd7   : > { %v905_v53 = vpack.c.bf16 (!%p820_p10), %v522_v50, %v520_v49  ;;  %v546_v23 = vld [vmem:[#allocation8 + $0xf8] sm:$0xff] (!%p820_p10)  ;;  %v543_v27 = vld [vmem:[#allocation8 + $0xe0] sm:$0xff] (!%p820_p10) }
  0xd8   : > { %v513_v30 = vld [vmem:[%s289_s26] sm:$0xff] (!%p820_p10)  ;;  %v514_v31 = vld [vmem:[%s289_s26 + $0x8] sm:$0xff] (!%p820_p10) }
  0xd9   : > { %868 = vmatpush1.bf16.msra.mxu0 %v867_v55  ;;  %956 = vmatpush1.bf16.msra.mxu1 %v867_v55  ;;  %v521_v55 = vld [vmem:[#allocation8 + $0x30] sm:$0xff] (!%p820_p10) }
  0xda   : > { %870 = vmatprep.subr.bf16.mxu0 %v869_v56  ;;  %941 = vmatprep.subr.bf16.mxu1 %v869_v56  ;;  %v524_v56 = vld [vmem:[#allocation8 + $0x48] sm:$0xff] (!%p820_p10)  ;;  %v907_v58 = vpack.c.bf16 (!%p820_p10), %v521_v55, %v519_v54 }
  0xdb   : > { %v909_v59 = vpack.c.bf16 (!%p820_p10), %v526_v57, %v524_v56 }
  0xdd   : > { %872 = vmatpush1.bf16.msra.mxu0 %v871_v61  ;;  %957 = vmatpush1.bf16.msra.mxu1 %v871_v61  ;;  %v525_v61 = vld [vmem:[#allocation8 + $0x50] sm:$0xff] (!%p820_p10) }
  0xde   : > { %874 = vmatprep.subr.bf16.mxu0 %v873_v62  ;;  %942 = vmatprep.subr.bf16.mxu1 %v873_v62  ;;  %v528_v62 = vld [vmem:[#allocation8 + $0x68] sm:$0xff] (!%p820_p10)  ;;  %v911_v0 = vpack.c.bf16 (!%p820_p10), %v525_v61, %v523_v60 }
  0xdf   : > { %v913_v1 = vpack.c.bf16 (!%p820_p10), %v530_v63, %v528_v62 }
  0xe1   : > { %876 = vmatpush1.bf16.msra.mxu0 %v875_v3  ;;  %958 = vmatpush1.bf16.msra.mxu1 %v875_v3  ;;  %v529_v3 = vld [vmem:[#allocation8 + $0x70] sm:$0xff] (!%p820_p10) }
  0xe2   : > { %878 = vmatprep.subr.bf16.mxu0 %v877_v4  ;;  %943 = vmatprep.subr.bf16.mxu1 %v877_v4  ;;  %v532_v4 = vld [vmem:[#allocation8 + $0x88] sm:$0xff] (!%p820_p10)  ;;  %v915_v6 = vpack.c.bf16 (!%p820_p10), %v529_v3, %v527_v2 }
  0xe3   : > { %v917_v7 = vpack.c.bf16 (!%p820_p10), %v534_v5, %v532_v4 }
  0xe5   : > { %880 = vmatpush1.bf16.msra.mxu0 %v879_v9  ;;  %959 = vmatpush1.bf16.msra.mxu1 %v879_v9  ;;  %v533_v9 = vld [vmem:[#allocation8 + $0x90] sm:$0xff] (!%p820_p10) }
  0xe6   : > { %882 = vmatprep.subr.bf16.mxu0 %v881_v10  ;;  %944 = vmatprep.subr.bf16.mxu1 %v881_v10  ;;  %v536_v10 = vld [vmem:[#allocation8 + $0xa8] sm:$0xff] (!%p820_p10)  ;;  %v919_v12 = vpack.c.bf16 (!%p820_p10), %v533_v9, %v531_v8 }
  0xe7   : > { %v921_v13 = vpack.c.bf16 (!%p820_p10), %v538_v11, %v536_v10 }
  0xe9   : > { %884 = vmatpush1.bf16.msra.mxu0 %v883_v15  ;;  %960 = vmatpush1.bf16.msra.mxu1 %v883_v15  ;;  %v537_v15 = vld [vmem:[#allocation8 + $0xb0] sm:$0xff] (!%p820_p10) }
  0xea   : > { %886 = vmatprep.subr.bf16.mxu0 %v885_v16  ;;  %945 = vmatprep.subr.bf16.mxu1 %v885_v16  ;;  %v540_v16 = vld [vmem:[#allocation8 + $0xc8] sm:$0xff] (!%p820_p10)  ;;  %v923_v18 = vpack.c.bf16 (!%p820_p10), %v537_v15, %v535_v14 }
  0xeb   : > { %v925_v19 = vpack.c.bf16 (!%p820_p10), %v542_v17, %v540_v16 }
  0xed   : > { %888 = vmatpush1.bf16.msra.mxu0 %v887_v21  ;;  %961 = vmatpush1.bf16.msra.mxu1 %v887_v21  ;;  %v541_v21 = vld [vmem:[#allocation8 + $0xd0] sm:$0xff] (!%p820_p10) }
  0xee   : > { %890 = vmatprep.subr.bf16.mxu0 %v889_v22  ;;  %946 = vmatprep.subr.bf16.mxu1 %v889_v22  ;;  %v544_v22 = vld [vmem:[#allocation8 + $0xe8] sm:$0xff] (!%p820_p10)  ;;  %v927_v24 = vpack.c.bf16 (!%p820_p10), %v541_v21, %v539_v20 }
  0xef   : > { %v929_v25 = vpack.c.bf16 (!%p820_p10), %v546_v23, %v544_v22 }
  0xf1   : > { %892 = vmatpush1.bf16.msra.mxu0 %v891_v28  ;;  %962 = vmatpush1.bf16.msra.mxu1 %v891_v28  ;;  %v545_v28 = vld [vmem:[#allocation8 + $0xf0] sm:$0xff] (!%p820_p10) }
  0xf2   : > { %894 = vmatprep.subr.bf16.mxu0 %v893_v29  ;;  %947 = vmatprep.subr.bf16.mxu1 %v893_v29  ;;  %v931_v29 = vpack.c.bf16 (!%p820_p10), %v545_v28, %v543_v27 }
  0xf5   : > { %896 = vmatpush1.bf16.msra.mxu0 %v895_v34  ;;  %963 = vmatpush1.bf16.msra.mxu1 %v895_v34 }
  0xf6   : > { %898 = vmatprep.subr.bf16.mxu0 %v897_v36  ;;  %948 = vmatprep.subr.bf16.mxu1 %v897_v36 }
  0xf9   : > { %900 = vmatpush1.bf16.msra.mxu0 %v899_v39  ;;  %964 = vmatpush1.bf16.msra.mxu1 %v899_v39 }
  0xfa   : > { %902 = vmatprep.subr.bf16.mxu0 (!%p820_p10), %v901_v47  ;;  %965 = vmatprep.subr.bf16.mxu1 (!%p820_p10), %v901_v47 }
  0xfc   : > { %817 = vmatmul.mubr.msk.f32.vlgmr.msra.gmra.mrb[0].mxu0 %vm354_vm1, %v344_v40  ;;  %819 = vmatmul.mubr.msk.f32.vlgmr.msra.gmra.mrb[0].mxu1 %vm354_vm1, %v346_v41 }
  0xfd   : > { %611 = vmatprep.mubr.f32.mxu0 (!%p820_p10), %v1336_v51  ;;  %617 = vmatprep.mubr.f32.mxu1 (!%p820_p10), %v1336_v51 }
  0xfe   : > { %904 = vmatpush1.bf16.msra.mxu0 (!%p820_p10), %v903_v52  ;;  %973 = vmatpush1.bf16.msra.mxu1 (!%p820_p10), %v903_v52 }
  0xff   : > { %906 = vmatprep.subr.bf16.mxu0 (!%p820_p10), %v905_v53  ;;  %966 = vmatprep.subr.bf16.mxu1 (!%p820_p10), %v905_v53 }
 0x102   : > { %908 = vmatpush1.bf16.msra.mxu0 (!%p820_p10), %v907_v58  ;;  %974 = vmatpush1.bf16.msra.mxu1 (!%p820_p10), %v907_v58 }
 0x103   : > { %910 = vmatprep.subr.bf16.mxu0 (!%p820_p10), %v909_v59  ;;  %967 = vmatprep.subr.bf16.mxu1 (!%p820_p10), %v909_v59 }
 0x106   : > { %912 = vmatpush1.bf16.msra.mxu0 (!%p820_p10), %v911_v0  ;;  %975 = vmatpush1.bf16.msra.mxu1 (!%p820_p10), %v911_v0 }
 0x107   : > { %914 = vmatprep.subr.bf16.mxu0 (!%p820_p10), %v913_v1  ;;  %968 = vmatprep.subr.bf16.mxu1 (!%p820_p10), %v913_v1 }
 0x10a   : > { %916 = vmatpush1.bf16.msra.mxu0 (!%p820_p10), %v915_v6  ;;  %976 = vmatpush1.bf16.msra.mxu1 (!%p820_p10), %v915_v6 }
 0x10b   : > { %918 = vmatprep.subr.bf16.mxu0 (!%p820_p10), %v917_v7  ;;  %969 = vmatprep.subr.bf16.mxu1 (!%p820_p10), %v917_v7 }
 0x10e   : > { %920 = vmatpush1.bf16.msra.mxu0 (!%p820_p10), %v919_v12  ;;  %977 = vmatpush1.bf16.msra.mxu1 (!%p820_p10), %v919_v12 }
 0x10f   : > { %922 = vmatprep.subr.bf16.mxu0 (!%p820_p10), %v921_v13  ;;  %970 = vmatprep.subr.bf16.mxu1 (!%p820_p10), %v921_v13 }
 0x112   : > { %924 = vmatpush1.bf16.msra.mxu0 (!%p820_p10), %v923_v18  ;;  %978 = vmatpush1.bf16.msra.mxu1 (!%p820_p10), %v923_v18 }
 0x113   : > { %926 = vmatprep.subr.bf16.mxu0 (!%p820_p10), %v925_v19  ;;  %971 = vmatprep.subr.bf16.mxu1 (!%p820_p10), %v925_v19 }
 0x116   : > { %928 = vmatpush1.bf16.msra.mxu0 (!%p820_p10), %v927_v24  ;;  %979 = vmatpush1.bf16.msra.mxu1 (!%p820_p10), %v927_v24 }
 0x117   : > { %930 = vmatprep.subr.bf16.mxu0 (!%p820_p10), %v929_v25  ;;  %972 = vmatprep.subr.bf16.mxu1 (!%p820_p10), %v929_v25 }
 0x11a   : > { %932 = vmatpush1.bf16.msra.mxu0 (!%p820_p10), %v931_v29  ;;  %980 = vmatpush1.bf16.msra.mxu1 (!%p820_p10), %v931_v29 }
 0x1cb   : > { %508 = sbr.rel (%p820_p10) target bundleno = 680 (0x2a8), region = 56 }
 0x1cf   : > { %v490_v42 = vpop.f32.mrb[0].mxu0  ;;  %v496_v43 = vpop.f32.mrb[0].mxu1 }
 0x1d0   : > { %501 = vst [vmem:[%s1694_s21] sm:$0xff] %v490_v42  ;;  %503 = vst [vmem:[%s1694_s21 + $0x10] sm:$0xff] %v496_v43  ;;  %v492_v44 = vpop.f32.mrb[1].mxu0  ;;  %v498_v45 = vpop.f32.mrb[1].mxu1  ;;  %612 = vmatmul.mubr.f32.vlgmr.msra.gmra.mrb[0].mxu0 (!%p820_p10), %v513_v30  ;;  %618 = vmatmul.mubr.f32.vlgmr.msra.gmra.mrb[0].mxu1 (!%p820_p10), %v514_v31 }
 0x1d1   : > { %502 = vst [vmem:[%s1694_s21 + $0x8] sm:$0xff] %v492_v44  ;;  %504 = vst [vmem:[%s1694_s21 + $0x18] sm:$0xff] %v498_v45 }
 0x1d7   : > { %v509_v32 = vld [vmem:[%s1694_s21] sm:$0xff]  ;;  %v511_v33 = vld [vmem:[%s1694_s21 + $0x10] sm:$0xff] }
 0x1d8   : > { %v510_v34 = vld [vmem:[%s1694_s21 + $0x8] sm:$0xff]  ;;  %v512_v36 = vld [vmem:[%s1694_s21 + $0x18] sm:$0xff] }
 0x2a3   : > { %v613_v37 = vpop.f32.mrb[0].mxu0  ;;  %v619_v38 = vpop.f32.mrb[0].mxu1 }
 0x2a4   : > { %v624_v39 = vadd.f32 %v613_v37, %v509_v32  ;;  %v626_v40 = vadd.f32 %v619_v38, %v511_v33  ;;  %v615_v41 = vpop.f32.mrb[1].mxu0  ;;  %v621_v42 = vpop.f32.mrb[1].mxu1 }
 0x2a5   : > { %v625_v43 = vadd.f32 %v615_v41, %v510_v34  ;;  %v627_v44 = vadd.f32 %v621_v42, %v512_v36 }
 0x2a6   : > { %628 = vst [vmem:[%s1694_s21] sm:$0xff] %v624_v39  ;;  %630 = vst [vmem:[%s1694_s21 + $0x10] sm:$0xff] %v626_v40 }
 0x2a7   : > { %629 = vst [vmem:[%s1694_s21 + $0x8] sm:$0xff] %v625_v43  ;;  %631 = vst [vmem:[%s1694_s21 + $0x18] sm:$0xff] %v627_v44 }
 0x2a8 PF: > { %s633_s18 = scalar_lea.sflag [#allocation4], %s1645_s10  ;;  %s1844_s15 = sld [smem:[#allocation20_spill]] }
 0x2ae   : > { %p1845_p11 = scmp.ne.s32.totalorder %s1844_s15, 0 }
 0x2af   : > { %s1846_s11 = sld [smem:[#allocation17_spill]] (%p1845_p11) }
 0x2b0   : > { %639 = sbr.rel (!%p1845_p11) target bundleno = 725 (0x2d5), region = 60 }
 0x2b5   : > { %s822_s28 = sshll.u32 (%p1845_p11), %s1846_s11, 1 }
 0x2b6   : > { %s642_s30 = ssub.s32 (%p1845_p11), 3, %s822_s28 }
 0x2b7   : > { %p643_p12 = scmp.lt.s32.totalorder %s642_s30, 2 }
 0x2b9   : > { %s1871_s30 = smov (!%p643_p12, %s642_s30), 2 }
 0x2ba   : > { %s1720_s27 = sshll.u32 %s1871_s30, 8 }
 0x2bb   : > { %s647_s7 = ssub.s32 512, %s1720_s27 }
 0x2bc   : > { %648 = vsyncadd %s633_s18, %s647_s7  ;;  %p824_p3 = scmp.ne.s32.totalorder %s1720_s27, 0  ;;  %s1847_s9 = sld [smem:[#allocation23_spill]] }
 0x2bd   : > { %s826_s12 = sshll.u32 %s1871_s30, 3  ;;  %s656_s29 = sshll.u32 %s1694_s21, 4  ;;  %s1735_s29 = int_to_ptr.vmem [resolvable:$true] %s656_s29 }
 0x2be   : > { %s1205_s14 = scalar_lea.vmem %s1735_s29, %s1720_s27  ;;  %s1337_s25 = smov [#allocation10]  }
 0x2bf   : > { %p1206_p9 = scmp.ne.s32.totalorder %s1735_s29, %s1205_s14  ;;  %s1209_s26 = sshll.u32 %s1337_s25, 4  ;;  %s1210_s26 = int_to_ptr.vmem [resolvable:$false] %s1209_s26 }
 0x2c0   : > { %s1211_s24 = scalar_lea.vmem %s1210_s26, 1024  ;;  %p1212_p1 = scmp.lt.s32.totalorder %s1735_s29, %s1210_s26 }
 0x2c1   : > { %p1207_p2 = pnand %p1206_p9, %p824_p3  ;;  %p1213_p8 = scmp.lt.s32.totalorder %s1211_s24, %s1205_s14 }
 0x2c2   : > { %s1731_s4 = scalar_lea.hbm %s1847_s9, %s815_s5 }
 0x2c3   : > { %p1208_p13 = pneg %p1207_p2  ;;  %p1214_p7 = por %p1213_p8, %p1212_p1 }
 0x2c5   : > { %p1215_p4 = pnand %p1214_p7, %p1208_p13 }
 0x2c7   : > { %1218 = shalt.err (!%p1215_p4)
}
 0x2c8   : > { %s1219_s5 = scalar_lea.hbm %s1731_s4, %s1720_s27  ;;  %s1223_s15 = scalar_lea.hbm %s1847_s9, 768 }
 0x2c9   : > { %p1220_p0 = scmp.ne.s32.totalorder %s1731_s4, %s1219_s5  ;;  %p1224_p11 = scmp.lt.u32.totalorder %s1731_s4, %s1847_s9 }
 0x2ca   : > { %p1225_p12 = scmp.lt.u32.totalorder %s1223_s15, %s1219_s5  ;;  %p1227_p2 = scmp.lt.u32.totalorder %s1219_s5, %s1731_s4 }
 0x2cb   : > { %p1221_p6 = pnand %p1220_p0, %p824_p3 }
 0x2cc   : > { %p1226_p9 = por %p1225_p12, %p1224_p11 }
 0x2cd   : > { %p1222_p10 = pneg %p1221_p6 }
 0x2ce   : > { %p1228_p13 = por %p1227_p2, %p1226_p9 }
 0x2d0   : > { %p1229_p1 = pnand %p1228_p13, %p1222_p10 }
 0x2d2   : > { %1232 = shalt.err (!%p1229_p1)
}
 0x2d3   : > { %s1338_s7 = smov 256   ;;  %s1339_s8 = smov 384  }
 0x2d4   : > { %662 = dma.vmem_to_hbm [thread:$0]  (%p824_p3), %s1735_s29, %s1720_s27, %s1731_s4, %s633_s18, %s1338_s7, %s1339_s8, %s826_s12  }
 0x2d5 PF: > { %s1848_s6 = sld [smem:[#allocation16_spill]]  ;;  %s1849_s14 = sld [smem:[#allocation22_spill]] }
 0x2db   : > { %s671_s25 = sand.u32 1, %s1848_s6   ;;  %p1850_p8 = scmp.ne.s32.totalorder %s1849_s14, 0 }
 0x2dc   : > { %s672_s26 = scalar_lea.sflag [#allocation4], %s671_s25 }
 0x2dd   : > { %p1001_p7 = pnand %p796_p5, %p1850_p8 }
 0x2df   : > { %1286 = dma.done.wait (!%p1001_p7), %s672_s26, 512  }
 0x2e0   : > { %1288 = vsyncadd (!%p1001_p7), %s672_s26, 4294966784  ;;  %s24_s23 = sadd.s32 1, %s1323_s23   ;;  %s1851_s30 = sld [smem:[#allocation21_spill]] }
 0x2e1   : > { %p21_p4 = scmp.ge.s32.totalorder %s24_s23, 4   ;;  %s1852_s10 = sld [smem:[#allocation19_spill]] }
 0x2e2   : > { %s1853_s27 = sld [smem:[#allocation18_spill]]  ;;  %s1854_s15 = smov %s1295_s16 }
 0x2e3   : > { %s1855_s16 = smov %s1299_s17  ;;  %s1857_s18 = smov %s1307_s19 }
 0x2e4   : > { %s1858_s19 = smov %s1311_s20  ;;  %s1860_s21 = smov %s1319_s22 }
 0x2e5   :  { %23 = sbr.rel (!%p21_p4) target bundleno = 13 (0xd), region = 106 }
 0x2e6   : > { %s1856_s17 = smov %s1851_s30 }
 0x2e7   : > { %s1859_s20 = smov %s1852_s10 }
 0x2e8   : > { %s1861_s22 = smov %s1853_s27 }
 0x2ec   :  { %677 = vsyncpa [#allocation3], 1 }
 0x2ed   :  { %679 = vsyncpa [#allocation3 + $0x1], 1 }
 0x2ee   :  { %680 = vsyncpa [#allocation6], 1 }
 0x2ef   :  { %682 = vsyncpa [#allocation6 + $0x1], 1 }
 0x2f0   :  { %683 = vsyncpa [#allocation9], 1 }
 0x2f1   :  { %684 = vsyncpa [#allocation4], 1 }
 0x2f2   :  { %686 = vsyncpa [#allocation4 + $0x1], 1 }

</bundles_post_ra>
